<compile_context>
chip_gen: v7x
topology: tpu7x:2x2x1
jax: 0.10.0
libtpu: 0.0.40
codegen_flags: <defaults>
</compile_context>

<pallas_src>
import functools

import jax
import jax.numpy as jnp
from jax.experimental import pallas as pl
from jax.experimental.pallas import tpu as pltpu

CONTEXT_LENGTH = 3
EMBEDDING_DIM = 2
HIDDEN_DIM = 100
VOCAB = 26          # len(stoi)
EPS = 1e-5          # nn.BatchNorm1d default eps

LANE = 128
HID_PAD = 128       # HIDDEN_DIM padded to lane width
VOCAB_PAD = 128     # VOCAB padded to lane width (fused one-hot K dim / logits N dim)
N_HIDDEN_MM = 4     # hidden->hidden Linear layers (layers 2..5)
N_BN = 5            # BatchNorm/Tanh layers


# --------------------------------------------------------------------------
# Chip-generation gating (static, decided once at import time).
# --------------------------------------------------------------------------
def _device_kind():
    try:
        return jax.devices()[0].device_kind.lower()
    except Exception:  # pragma: no cover - e.g. no device yet
        return ""


_KIND = _device_kind()
# bf16 tanh only where the EUP/VPU have a bf16 path (v6e, v7x). f32 elsewhere.
USE_BF16_TANH = ("v6" in _KIND) or ("v7" in _KIND)
# VMEM budget: v5e/v6e have 128 MiB physical; v7x has 64 MiB per TensorCore.
VMEM_LIMIT_BYTES = (44 * 1024 * 1024) if ("v7" in _KIND) else (100 * 1024 * 1024)


# --------------------------------------------------------------------------
# Kernel
# --------------------------------------------------------------------------
def _mlp_kernel(idx_ref, t_ref, wh_ref, w6_ref, g_ref, be_ref, b6_ref, o_ref,
                *, bf16_tanh):
    """Whole forward pass on one VMEM-resident batch.

    idx_ref: (B, 3)        int32  token indices
    t_ref:   (128, 128)    bf16   fused Embedding+Linear1 lookup table
                                  (row c*26+v = emb[v] @ W1[2c:2c+2,:], rest 0)
    wh_ref:  (4, 128, 128) bf16   hidden Linear weights (zero padded)
    w6_ref:  (128, 128)    bf16   final Linear weight (zero padded)
    g_ref:   (5, 1, 128)   f32    BN gammas (padded lanes = 1)
    be_ref:  (5, 1, 128)   f32    BN betas  (padded lanes = 0)
    b6_ref:  (1, 128)      f32    final bias (padded lanes = 0)
    o_ref:   (B, 128)      bf16   lane-dense padded logits
    """
    B = idx_ref.shape[0]
    inv_b = 1.0 / B

    def bn_tanh(z, layer):
        # Training-mode BatchNorm1d folded to a single FMA:
        #   a = gamma * rsqrt(var + eps); c = beta - mean*a; out = tanh(z*a + c)
        s1 = jnp.sum(z, axis=0, keepdims=True)
        s2 = jnp.sum(z * z, axis=0, keepdims=True)
        mean = s1 * inv_b
        var = s2 * inv_b - mean * mean          # biased batch variance
        a = g_ref[layer] * jax.lax.rsqrt(var + EPS)
        c = be_ref[layer] - mean * a
        zn = z * a + c
        if bf16_tanh:
            # v6e/v7x: bf16 EUP tanh; result is already MXU-ready bf16.
            return jnp.tanh(zn.astype(jnp.bfloat16))
        return jnp.tanh(zn)                     # v5e: keep f32 elementwise math

    def to_mxu(h):
        return h if h.dtype == jnp.bfloat16 else h.astype(jnp.bfloat16)

    # --- layer 1: Embedding + Linear1 as ONE fused one-hot MXU gather -------
    idx = idx_ref[...]                                              # (B, 3)
    lanes = jax.lax.broadcasted_iota(jnp.int32, (B, VOCAB_PAD), 1)
    onehot = ((idx[:, 0:1] == lanes)
              | (idx[:, 1:2] + VOCAB == lanes)
              | (idx[:, 2:3] + 2 * VOCAB == lanes)).astype(jnp.bfloat16)
    z = jnp.dot(onehot, t_ref[...], preferred_element_type=jnp.float32)
    # Biases b1..b5 are omitted: the BN batch-mean subtraction cancels them.
    h = bn_tanh(z, 0)

    # --- layers 2..5: [Linear -> BN -> Tanh] ---------------------------------
    for i in range(N_HIDDEN_MM):
        z = jnp.dot(to_mxu(h), wh_ref[i], preferred_element_type=jnp.float32)
        h = bn_tanh(z, i + 1)

    # --- final Linear, lane-dense 128-wide bf16 store ------------------------
    logits = jnp.dot(to_mxu(h), w6_ref[...],
                     preferred_element_type=jnp.float32) + b6_ref[...]
    o_ref[...] = logits.astype(o_ref.dtype)


# --------------------------------------------------------------------------
# Parameter init (PyTorch-default init, folded/padded/cast once)
# --------------------------------------------------------------------------
def init_params(key):
    keys = jax.random.split(key, 8)

    # nn.Embedding default: N(0, 1)
    emb = jax.random.normal(keys[0], (VOCAB, EMBEDDING_DIM), jnp.float32)

    def linear(k, fan_in, fan_out):
        # nn.Linear default: U(-1/sqrt(fan_in), 1/sqrt(fan_in)); stored (in, out)
        bound = 1.0 / float(fan_in) ** 0.5
        kw, kb = jax.random.split(k)
        w = jax.random.uniform(kw, (fan_in, fan_out), jnp.float32, -bound, bound)
        b = jax.random.uniform(kb, (fan_out,), jnp.float32, -bound, bound)
        return w, b

    in_dim = EMBEDDING_DIM * CONTEXT_LENGTH
    w1, _ = linear(keys[1], in_dim, HIDDEN_DIM)       # b1 cancelled by BN

    # Fused Embedding+Linear1 table: row (c*26 + v) = emb[v] @ W1[2c:2c+2, :].
    t = jnp.zeros((VOCAB_PAD, HID_PAD), jnp.float32)
    for c in range(CONTEXT_LENGTH):
        tc = emb @ w1[c * EMBEDDING_DIM:(c + 1) * EMBEDDING_DIM, :]   # (26, 100)
        t = t.at[c * VOCAB:(c + 1) * VOCAB, :HIDDEN_DIM].set(tc)

    # Hidden Linear weights, stacked + zero padded (b2..b5 cancelled by BN).
    wh = jnp.zeros((N_HIDDEN_MM, HID_PAD, HID_PAD), jnp.float32)
    for i in range(N_HIDDEN_MM):
        w, _ = linear(keys[2 + i], HIDDEN_DIM, HIDDEN_DIM)
        wh = wh.at[i, :HIDDEN_DIM, :HIDDEN_DIM].set(w)

    # Final Linear, padded to a lane-dense (128, 128) slab.
    w6f, b6f = linear(keys[6], HIDDEN_DIM, VOCAB)
    w6 = jnp.zeros((HID_PAD, VOCAB_PAD), jnp.float32).at[:HIDDEN_DIM, :VOCAB].set(w6f)
    b6 = jnp.zeros((1, VOCAB_PAD), jnp.float32).at[0, :VOCAB].set(b6f)

    # BN affine params (gamma=1, beta=0); padded lanes stay exactly 0 through BN.
    g = jnp.ones((N_BN, 1, HID_PAD), jnp.float32)
    be = jnp.zeros((N_BN, 1, HID_PAD), jnp.float32)

    return {
        "t": t.astype(jnp.bfloat16),
        "wh": wh.astype(jnp.bfloat16),
        "w6": w6.astype(jnp.bfloat16),
        "b6": b6,
        "g": g,
        "be": be,
    }


# --------------------------------------------------------------------------
# Wrappers
# --------------------------------------------------------------------------
def _forward_padded(x_idx, params):
    """x_idx: int32 (B, 3) token indices in [0, VOCAB). Returns (B, 128) bf16."""
    B = x_idx.shape[0]
    # Whole batch is VMEM-resident (BN needs full-batch statistics).
    # TODO(synk): for very large B, restructure as a batch-tiled two-pass BN
    #             (grid over batch tiles + sum/sumsq accumulators), and on v7x
    #             split the batch across the two TensorCores with a CMEM /
    #             core_barrier exchange of the per-layer (1,128) stats.
    vmem = pl.BlockSpec(memory_space=pltpu.MemorySpace.VMEM)
    inputs = (x_idx, params["t"], params["wh"], params["w6"],
              params["g"], params["be"], params["b6"])

    param_bytes = sum(int(v.size) * v.dtype.itemsize for v in params.values())
    cost = pl.CostEstimate(
        flops=2 * B * HID_PAD * VOCAB_PAD * 6,        # 6 (B,128)x(128,128) matmuls
        transcendentals=N_BN * B * HID_PAD,           # tanh
        bytes_accessed=B * (CONTEXT_LENGTH * 4 + VOCAB_PAD * 2) + param_bytes)

    kernel = functools.partial(_mlp_kernel, bf16_tanh=USE_BF16_TANH)
    return pl.pallas_call(
        kernel,
        out_shape=jax.ShapeDtypeStruct((B, VOCAB_PAD), jnp.bfloat16),
        in_specs=[vmem] * len(inputs),
        out_specs=vmem,
        compiler_params=pltpu.CompilerParams(vmem_limit_bytes=VMEM_LIMIT_BYTES),
        cost_estimate=cost,
    )(*inputs)


# Preferred entry point: lane-padded bf16 logits, no post-kernel slice.
# Mask/ignore lanes >= VOCAB in the downstream loss.
network_forward_padded = jax.jit(_forward_padded)


@jax.jit
def network_forward(x_idx, params):
    """API-compatible (B, VOCAB) f32 logits (adds one extra slice/cast pass)."""
    return _forward_padded(x_idx, params)[:, :VOCAB].astype(jnp.float32)


# --------------------------------------------------------------------------
# Pure-JAX reference (mirrors the kernel's folded params and dtype choices)
# --------------------------------------------------------------------------
def reference_forward(x_idx, params, bf16_tanh=USE_BF16_TANH):
    B = x_idx.shape[0]
    oh = (jax.nn.one_hot(x_idx[:, 0], VOCAB_PAD)
          + jax.nn.one_hot(x_idx[:, 1] + VOCAB, VOCAB_PAD)
          + jax.nn.one_hot(x_idx[:, 2] + 2 * VOCAB, VOCAB_PAD)).astype(jnp.bfloat16)
    z = jnp.dot(oh, params["t"], preferred_element_type=jnp.float32)

    def bn_tanh(z, g, be):
        mean = jnp.mean(z, axis=0, keepdims=True)
        var = jnp.mean(z * z, axis=0, keepdims=True) - mean * mean
        a = g * jax.lax.rsqrt(var + EPS)
        c = be - mean * a
        zn = z * a + c
        return jnp.tanh(zn.astype(jnp.bfloat16)) if bf16_tanh else jnp.tanh(zn)

    h = bn_tanh(z, params["g"][0], params["be"][0])
    for i in range(N_HIDDEN_MM):
        z = jnp.dot(h.astype(jnp.bfloat16), params["wh"][i],
                    preferred_element_type=jnp.float32)
        h = bn_tanh(z, params["g"][i + 1], params["be"][i + 1])
    out = jnp.dot(h.astype(jnp.bfloat16), params["w6"],
                  preferred_element_type=jnp.float32) + params["b6"]
    return out[:, :VOCAB]


if __name__ == "__main__":
    key = jax.random.PRNGKey(0)
    k_params, k_data = jax.random.split(key)

    params = init_params(k_params)

    B = 8
    x_idx = jax.random.randint(k_data, (B, CONTEXT_LENGTH), 0, VOCAB,
                               dtype=jnp.int32)

    # Fast path: lane-padded bf16 logits straight from the kernel.
    padded = network_forward_padded(x_idx, params)
    jax.block_until_ready(padded)
    assert padded.shape == (B, VOCAB_PAD)
    assert padded.dtype == jnp.bfloat16

    # API-compatible path for the correctness check.
    logits = network_forward(x_idx, params)
    jax.block_until_ready(logits)
    assert logits.shape == (B, VOCAB)
    assert logits.dtype == jnp.float32

    ref = reference_forward(x_idx, params)
    max_err = float(jnp.max(jnp.abs(logits - ref.astype(jnp.float32))))
    assert max_err < 5e-2, max_err

    print("KERNEL_OK")
</pallas_src>

<mosaic_0001>
module attributes {stable_mosaic.version = 11 : i64} {
  func.func @_mlp_kernel(%arg0: memref<8x3xi32, #tpu.memory_space<vmem>>, %arg1: memref<128x128xbf16, #tpu.memory_space<vmem>>, %arg2: memref<4x128x128xbf16, #tpu.memory_space<vmem>>, %arg3: memref<128x128xbf16, #tpu.memory_space<vmem>>, %arg4: memref<5x1x128xf32, #tpu.memory_space<vmem>>, %arg5: memref<5x1x128xf32, #tpu.memory_space<vmem>>, %arg6: memref<1x128xf32, #tpu.memory_space<vmem>>, %arg7: memref<8x128xbf16, #tpu.memory_space<vmem>>) attributes {dimension_semantics = [], scalar_prefetch = 0 : i64, scratch_operands = 0 : i64, tpu.core_type = #tpu.core_type<tc>} {
    %c0 = arith.constant 0 : index
    %c0_0 = arith.constant 0 : index
    %0 = vector.load %arg0[%c0, %c0_0] : memref<8x3xi32, #tpu.memory_space<vmem>>, vector<8x3xi32>
    %1 = tpu.iota {dimensions = array<i32: 1>} : vector<8x128xi32>
    %2 = vector.extract_strided_slice %0 {offsets = [0, 0], sizes = [8, 1], strides = [1, 1]} : vector<8x3xi32> to vector<8x1xi32>
    %3 = vector.broadcast %2 : vector<8x1xi32> to vector<8x128xi32>
    %4 = arith.cmpi eq, %3, %1 : vector<8x128xi32>
    %5 = vector.extract_strided_slice %0 {offsets = [0, 1], sizes = [8, 1], strides = [1, 1]} : vector<8x3xi32> to vector<8x1xi32>
    %c26_i32 = arith.constant 26 : i32
    %6 = vector.broadcast %c26_i32 : i32 to vector<8x1xi32>
    %7 = arith.addi %5, %6 : vector<8x1xi32>
    %8 = vector.broadcast %7 : vector<8x1xi32> to vector<8x128xi32>
    %9 = arith.cmpi eq, %8, %1 : vector<8x128xi32>
    %10 = arith.ori %4, %9 : vector<8x128xi1>
    %11 = vector.extract_strided_slice %0 {offsets = [0, 2], sizes = [8, 1], strides = [1, 1]} : vector<8x3xi32> to vector<8x1xi32>
    %c52_i32 = arith.constant 52 : i32
    %12 = vector.broadcast %c52_i32 : i32 to vector<8x1xi32>
    %13 = arith.addi %11, %12 : vector<8x1xi32>
    %14 = vector.broadcast %13 : vector<8x1xi32> to vector<8x128xi32>
    %15 = arith.cmpi eq, %14, %1 : vector<8x128xi32>
    %16 = arith.ori %10, %15 : vector<8x128xi1>
    %17 = arith.extui %16 : vector<8x128xi1> to vector<8x128xi32>
    %18 = arith.sitofp %17 : vector<8x128xi32> to vector<8x128xf32>
    %19 = arith.truncf %18 : vector<8x128xf32> to vector<8x128xbf16>
    %c0_1 = arith.constant 0 : index
    %c0_2 = arith.constant 0 : index
    %20 = vector.load %arg1[%c0_1, %c0_2] : memref<128x128xbf16, #tpu.memory_space<vmem>>, vector<128x128xbf16>
    %cst = arith.constant dense<0.000000e+00> : vector<8x128xf32>
    %21 = tpu.matmul %19, %20, %cst {dimension_numbers = #tpu.dot_dimension_numbers<[1], [0], [0], [1], [0, 0, 1, 1], [], []>} : vector<8x128xbf16>, vector<128x128xbf16>, vector<8x128xf32> -> vector<8x128xf32>
    %cst_3 = arith.constant dense<0.000000e+00> : vector<128xf32>
    %22 = vector.multi_reduction <add>, %21, %cst_3 [0] : vector<8x128xf32> to vector<128xf32>
    %23 = vector.shape_cast %22 : vector<128xf32> to vector<1x128xf32>
    %24 = arith.mulf %21, %21 : vector<8x128xf32>
    %cst_4 = arith.constant dense<0.000000e+00> : vector<128xf32>
    %25 = vector.multi_reduction <add>, %24, %cst_4 [0] : vector<8x128xf32> to vector<128xf32>
    %26 = vector.shape_cast %25 : vector<128xf32> to vector<1x128xf32>
    %cst_5 = arith.constant 1.250000e-01 : f32
    %27 = vector.broadcast %cst_5 : f32 to vector<1x128xf32>
    %28 = arith.mulf %23, %27 : vector<1x128xf32>
    %cst_6 = arith.constant 1.250000e-01 : f32
    %29 = vector.broadcast %cst_6 : f32 to vector<1x128xf32>
    %30 = arith.mulf %26, %29 : vector<1x128xf32>
    %31 = arith.mulf %28, %28 : vector<1x128xf32>
    %32 = arith.subf %30, %31 : vector<1x128xf32>
    %c0_7 = arith.constant 0 : index
    %c0_8 = arith.constant 0 : index
    %c0_9 = arith.constant 0 : index
    %33 = vector.load %arg4[%c0_7, %c0_8, %c0_9] : memref<5x1x128xf32, #tpu.memory_space<vmem>>, vector<1x1x128xf32>
    %34 = vector.shape_cast %33 : vector<1x1x128xf32> to vector<1x128xf32>
    %cst_10 = arith.constant 9.99999974E-6 : f32
    %35 = vector.broadcast %cst_10 : f32 to vector<1x128xf32>
    %36 = arith.addf %32, %35 : vector<1x128xf32>
    %37 = math.rsqrt %36 : vector<1x128xf32>
    %38 = arith.mulf %34, %37 : vector<1x128xf32>
    %c0_11 = arith.constant 0 : index
    %c0_12 = arith.constant 0 : index
    %c0_13 = arith.constant 0 : index
    %39 = vector.load %arg5[%c0_11, %c0_12, %c0_13] : memref<5x1x128xf32, #tpu.memory_space<vmem>>, vector<1x1x128xf32>
    %40 = vector.shape_cast %39 : vector<1x1x128xf32> to vector<1x128xf32>
    %41 = arith.mulf %28, %38 : vector<1x128xf32>
    %42 = arith.subf %40, %41 : vector<1x128xf32>
    %43 = vector.broadcast %38 : vector<1x128xf32> to vector<8x128xf32>
    %44 = arith.mulf %21, %43 : vector<8x128xf32>
    %45 = vector.broadcast %42 : vector<1x128xf32> to vector<8x128xf32>
    %46 = arith.addf %44, %45 : vector<8x128xf32>
    %47 = math.tanh %46 : vector<8x128xf32>
    %48 = arith.truncf %47 : vector<8x128xf32> to vector<8x128xbf16>
    %c0_14 = arith.constant 0 : index
    %c0_15 = arith.constant 0 : index
    %c0_16 = arith.constant 0 : index
    %49 = vector.load %arg2[%c0_14, %c0_15, %c0_16] : memref<4x128x128xbf16, #tpu.memory_space<vmem>>, vector<1x128x128xbf16>
    %50 = vector.shape_cast %49 : vector<1x128x128xbf16> to vector<128x128xbf16>
    %cst_17 = arith.constant dense<0.000000e+00> : vector<8x128xf32>
    %51 = tpu.matmul %48, %50, %cst_17 {dimension_numbers = #tpu.dot_dimension_numbers<[1], [0], [0], [1], [0, 0, 1, 1], [], []>} : vector<8x128xbf16>, vector<128x128xbf16>, vector<8x128xf32> -> vector<8x128xf32>
    %cst_18 = arith.constant dense<0.000000e+00> : vector<128xf32>
    %52 = vector.multi_reduction <add>, %51, %cst_18 [0] : vector<8x128xf32> to vector<128xf32>
    %53 = vector.shape_cast %52 : vector<128xf32> to vector<1x128xf32>
    %54 = arith.mulf %51, %51 : vector<8x128xf32>
    %cst_19 = arith.constant dense<0.000000e+00> : vector<128xf32>
    %55 = vector.multi_reduction <add>, %54, %cst_19 [0] : vector<8x128xf32> to vector<128xf32>
    %56 = vector.shape_cast %55 : vector<128xf32> to vector<1x128xf32>
    %cst_20 = arith.constant 1.250000e-01 : f32
    %57 = vector.broadcast %cst_20 : f32 to vector<1x128xf32>
    %58 = arith.mulf %53, %57 : vector<1x128xf32>
    %cst_21 = arith.constant 1.250000e-01 : f32
    %59 = vector.broadcast %cst_21 : f32 to vector<1x128xf32>
    %60 = arith.mulf %56, %59 : vector<1x128xf32>
    %61 = arith.mulf %58, %58 : vector<1x128xf32>
    %62 = arith.subf %60, %61 : vector<1x128xf32>
    %c1 = arith.constant 1 : index
    %c0_22 = arith.constant 0 : index
    %c0_23 = arith.constant 0 : index
    %63 = vector.load %arg4[%c1, %c0_22, %c0_23] : memref<5x1x128xf32, #tpu.memory_space<vmem>>, vector<1x1x128xf32>
    %64 = vector.shape_cast %63 : vector<1x1x128xf32> to vector<1x128xf32>
    %cst_24 = arith.constant 9.99999974E-6 : f32
    %65 = vector.broadcast %cst_24 : f32 to vector<1x128xf32>
    %66 = arith.addf %62, %65 : vector<1x128xf32>
    %67 = math.rsqrt %66 : vector<1x128xf32>
    %68 = arith.mulf %64, %67 : vector<1x128xf32>
    %c1_25 = arith.constant 1 : index
    %c0_26 = arith.constant 0 : index
    %c0_27 = arith.constant 0 : index
    %69 = vector.load %arg5[%c1_25, %c0_26, %c0_27] : memref<5x1x128xf32, #tpu.memory_space<vmem>>, vector<1x1x128xf32>
    %70 = vector.shape_cast %69 : vector<1x1x128xf32> to vector<1x128xf32>
    %71 = arith.mulf %58, %68 : vector<1x128xf32>
    %72 = arith.subf %70, %71 : vector<1x128xf32>
    %73 = vector.broadcast %68 : vector<1x128xf32> to vector<8x128xf32>
    %74 = arith.mulf %51, %73 : vector<8x128xf32>
    %75 = vector.broadcast %72 : vector<1x128xf32> to vector<8x128xf32>
    %76 = arith.addf %74, %75 : vector<8x128xf32>
    %77 = math.tanh %76 : vector<8x128xf32>
    %78 = arith.truncf %77 : vector<8x128xf32> to vector<8x128xbf16>
    %c1_28 = arith.constant 1 : index
    %c0_29 = arith.constant 0 : index
    %c0_30 = arith.constant 0 : index
    %79 = vector.load %arg2[%c1_28, %c0_29, %c0_30] : memref<4x128x128xbf16, #tpu.memory_space<vmem>>, vector<1x128x128xbf16>
    %80 = vector.shape_cast %79 : vector<1x128x128xbf16> to vector<128x128xbf16>
    %cst_31 = arith.constant dense<0.000000e+00> : vector<8x128xf32>
    %81 = tpu.matmul %78, %80, %cst_31 {dimension_numbers = #tpu.dot_dimension_numbers<[1], [0], [0], [1], [0, 0, 1, 1], [], []>} : vector<8x128xbf16>, vector<128x128xbf16>, vector<8x128xf32> -> vector<8x128xf32>
    %cst_32 = arith.constant dense<0.000000e+00> : vector<128xf32>
    %82 = vector.multi_reduction <add>, %81, %cst_32 [0] : vector<8x128xf32> to vector<128xf32>
    %83 = vector.shape_cast %82 : vector<128xf32> to vector<1x128xf32>
    %84 = arith.mulf %81, %81 : vector<8x128xf32>
    %cst_33 = arith.constant dense<0.000000e+00> : vector<128xf32>
    %85 = vector.multi_reduction <add>, %84, %cst_33 [0] : vector<8x128xf32> to vector<128xf32>
    %86 = vector.shape_cast %85 : vector<128xf32> to vector<1x128xf32>
    %cst_34 = arith.constant 1.250000e-01 : f32
    %87 = vector.broadcast %cst_34 : f32 to vector<1x128xf32>
    %88 = arith.mulf %83, %87 : vector<1x128xf32>
    %cst_35 = arith.constant 1.250000e-01 : f32
    %89 = vector.broadcast %cst_35 : f32 to vector<1x128xf32>
    %90 = arith.mulf %86, %89 : vector<1x128xf32>
    %91 = arith.mulf %88, %88 : vector<1x128xf32>
    %92 = arith.subf %90, %91 : vector<1x128xf32>
    %c2 = arith.constant 2 : index
    %c0_36 = arith.constant 0 : index
    %c0_37 = arith.constant 0 : index
    %93 = vector.load %arg4[%c2, %c0_36, %c0_37] : memref<5x1x128xf32, #tpu.memory_space<vmem>>, vector<1x1x128xf32>
    %94 = vector.shape_cast %93 : vector<1x1x128xf32> to vector<1x128xf32>
    %cst_38 = arith.constant 9.99999974E-6 : f32
    %95 = vector.broadcast %cst_38 : f32 to vector<1x128xf32>
    %96 = arith.addf %92, %95 : vector<1x128xf32>
    %97 = math.rsqrt %96 : vector<1x128xf32>
    %98 = arith.mulf %94, %97 : vector<1x128xf32>
    %c2_39 = arith.constant 2 : index
    %c0_40 = arith.constant 0 : index
    %c0_41 = arith.constant 0 : index
    %99 = vector.load %arg5[%c2_39, %c0_40, %c0_41] : memref<5x1x128xf32, #tpu.memory_space<vmem>>, vector<1x1x128xf32>
    %100 = vector.shape_cast %99 : vector<1x1x128xf32> to vector<1x128xf32>
    %101 = arith.mulf %88, %98 : vector<1x128xf32>
    %102 = arith.subf %100, %101 : vector<1x128xf32>
    %103 = vector.broadcast %98 : vector<1x128xf32> to vector<8x128xf32>
    %104 = arith.mulf %81, %103 : vector<8x128xf32>
    %105 = vector.broadcast %102 : vector<1x128xf32> to vector<8x128xf32>
    %106 = arith.addf %104, %105 : vector<8x128xf32>
    %107 = math.tanh %106 : vector<8x128xf32>
    %108 = arith.truncf %107 : vector<8x128xf32> to vector<8x128xbf16>
    %c2_42 = arith.constant 2 : index
    %c0_43 = arith.constant 0 : index
    %c0_44 = arith.constant 0 : index
    %109 = vector.load %arg2[%c2_42, %c0_43, %c0_44] : memref<4x128x128xbf16, #tpu.memory_space<vmem>>, vector<1x128x128xbf16>
    %110 = vector.shape_cast %109 : vector<1x128x128xbf16> to vector<128x128xbf16>
    %cst_45 = arith.constant dense<0.000000e+00> : vector<8x128xf32>
    %111 = tpu.matmul %108, %110, %cst_45 {dimension_numbers = #tpu.dot_dimension_numbers<[1], [0], [0], [1], [0, 0, 1, 1], [], []>} : vector<8x128xbf16>, vector<128x128xbf16>, vector<8x128xf32> -> vector<8x128xf32>
    %cst_46 = arith.constant dense<0.000000e+00> : vector<128xf32>
    %112 = vector.multi_reduction <add>, %111, %cst_46 [0] : vector<8x128xf32> to vector<128xf32>
    %113 = vector.shape_cast %112 : vector<128xf32> to vector<1x128xf32>
    %114 = arith.mulf %111, %111 : vector<8x128xf32>
    %cst_47 = arith.constant dense<0.000000e+00> : vector<128xf32>
    %115 = vector.multi_reduction <add>, %114, %cst_47 [0] : vector<8x128xf32> to vector<128xf32>
    %116 = vector.shape_cast %115 : vector<128xf32> to vector<1x128xf32>
    %cst_48 = arith.constant 1.250000e-01 : f32
    %117 = vector.broadcast %cst_48 : f32 to vector<1x128xf32>
    %118 = arith.mulf %113, %117 : vector<1x128xf32>
    %cst_49 = arith.constant 1.250000e-01 : f32
    %119 = vector.broadcast %cst_49 : f32 to vector<1x128xf32>
    %120 = arith.mulf %116, %119 : vector<1x128xf32>
    %121 = arith.mulf %118, %118 : vector<1x128xf32>
    %122 = arith.subf %120, %121 : vector<1x128xf32>
    %c3 = arith.constant 3 : index
    %c0_50 = arith.constant 0 : index
    %c0_51 = arith.constant 0 : index
    %123 = vector.load %arg4[%c3, %c0_50, %c0_51] : memref<5x1x128xf32, #tpu.memory_space<vmem>>, vector<1x1x128xf32>
    %124 = vector.shape_cast %123 : vector<1x1x128xf32> to vector<1x128xf32>
    %cst_52 = arith.constant 9.99999974E-6 : f32
    %125 = vector.broadcast %cst_52 : f32 to vector<1x128xf32>
    %126 = arith.addf %122, %125 : vector<1x128xf32>
    %127 = math.rsqrt %126 : vector<1x128xf32>
    %128 = arith.mulf %124, %127 : vector<1x128xf32>
    %c3_53 = arith.constant 3 : index
    %c0_54 = arith.constant 0 : index
    %c0_55 = arith.constant 0 : index
    %129 = vector.load %arg5[%c3_53, %c0_54, %c0_55] : memref<5x1x128xf32, #tpu.memory_space<vmem>>, vector<1x1x128xf32>
    %130 = vector.shape_cast %129 : vector<1x1x128xf32> to vector<1x128xf32>
    %131 = arith.mulf %118, %128 : vector<1x128xf32>
    %132 = arith.subf %130, %131 : vector<1x128xf32>
    %133 = vector.broadcast %128 : vector<1x128xf32> to vector<8x128xf32>
    %134 = arith.mulf %111, %133 : vector<8x128xf32>
    %135 = vector.broadcast %132 : vector<1x128xf32> to vector<8x128xf32>
    %136 = arith.addf %134, %135 : vector<8x128xf32>
    %137 = math.tanh %136 : vector<8x128xf32>
    %138 = arith.truncf %137 : vector<8x128xf32> to vector<8x128xbf16>
    %c3_56 = arith.constant 3 : index
    %c0_57 = arith.constant 0 : index
    %c0_58 = arith.constant 0 : index
    %139 = vector.load %arg2[%c3_56, %c0_57, %c0_58] : memref<4x128x128xbf16, #tpu.memory_space<vmem>>, vector<1x128x128xbf16>
    %140 = vector.shape_cast %139 : vector<1x128x128xbf16> to vector<128x128xbf16>
    %cst_59 = arith.constant dense<0.000000e+00> : vector<8x128xf32>
    %141 = tpu.matmul %138, %140, %cst_59 {dimension_numbers = #tpu.dot_dimension_numbers<[1], [0], [0], [1], [0, 0, 1, 1], [], []>} : vector<8x128xbf16>, vector<128x128xbf16>, vector<8x128xf32> -> vector<8x128xf32>
    %cst_60 = arith.constant dense<0.000000e+00> : vector<128xf32>
    %142 = vector.multi_reduction <add>, %141, %cst_60 [0] : vector<8x128xf32> to vector<128xf32>
    %143 = vector.shape_cast %142 : vector<128xf32> to vector<1x128xf32>
    %144 = arith.mulf %141, %141 : vector<8x128xf32>
    %cst_61 = arith.constant dense<0.000000e+00> : vector<128xf32>
    %145 = vector.multi_reduction <add>, %144, %cst_61 [0] : vector<8x128xf32> to vector<128xf32>
    %146 = vector.shape_cast %145 : vector<128xf32> to vector<1x128xf32>
    %cst_62 = arith.constant 1.250000e-01 : f32
    %147 = vector.broadcast %cst_62 : f32 to vector<1x128xf32>
    %148 = arith.mulf %143, %147 : vector<1x128xf32>
    %cst_63 = arith.constant 1.250000e-01 : f32
    %149 = vector.broadcast %cst_63 : f32 to vector<1x128xf32>
    %150 = arith.mulf %146, %149 : vector<1x128xf32>
    %151 = arith.mulf %148, %148 : vector<1x128xf32>
    %152 = arith.subf %150, %151 : vector<1x128xf32>
    %c4 = arith.constant 4 : index
    %c0_64 = arith.constant 0 : index
    %c0_65 = arith.constant 0 : index
    %153 = vector.load %arg4[%c4, %c0_64, %c0_65] : memref<5x1x128xf32, #tpu.memory_space<vmem>>, vector<1x1x128xf32>
    %154 = vector.shape_cast %153 : vector<1x1x128xf32> to vector<1x128xf32>
    %cst_66 = arith.constant 9.99999974E-6 : f32
    %155 = vector.broadcast %cst_66 : f32 to vector<1x128xf32>
    %156 = arith.addf %152, %155 : vector<1x128xf32>
    %157 = math.rsqrt %156 : vector<1x128xf32>
    %158 = arith.mulf %154, %157 : vector<1x128xf32>
    %c4_67 = arith.constant 4 : index
    %c0_68 = arith.constant 0 : index
    %c0_69 = arith.constant 0 : index
    %159 = vector.load %arg5[%c4_67, %c0_68, %c0_69] : memref<5x1x128xf32, #tpu.memory_space<vmem>>, vector<1x1x128xf32>
    %160 = vector.shape_cast %159 : vector<1x1x128xf32> to vector<1x128xf32>
    %161 = arith.mulf %148, %158 : vector<1x128xf32>
    %162 = arith.subf %160, %161 : vector<1x128xf32>
    %163 = vector.broadcast %158 : vector<1x128xf32> to vector<8x128xf32>
    %164 = arith.mulf %141, %163 : vector<8x128xf32>
    %165 = vector.broadcast %162 : vector<1x128xf32> to vector<8x128xf32>
    %166 = arith.addf %164, %165 : vector<8x128xf32>
    %167 = math.tanh %166 : vector<8x128xf32>
    %168 = arith.truncf %167 : vector<8x128xf32> to vector<8x128xbf16>
    %c0_70 = arith.constant 0 : index
    %c0_71 = arith.constant 0 : index
    %169 = vector.load %arg3[%c0_70, %c0_71] : memref<128x128xbf16, #tpu.memory_space<vmem>>, vector<128x128xbf16>
    %cst_72 = arith.constant dense<0.000000e+00> : vector<8x128xf32>
    %170 = tpu.matmul %168, %169, %cst_72 {dimension_numbers = #tpu.dot_dimension_numbers<[1], [0], [0], [1], [0, 0, 1, 1], [], []>} : vector<8x128xbf16>, vector<128x128xbf16>, vector<8x128xf32> -> vector<8x128xf32>
    %c0_73 = arith.constant 0 : index
    %c0_74 = arith.constant 0 : index
    %171 = vector.load %arg6[%c0_73, %c0_74] : memref<1x128xf32, #tpu.memory_space<vmem>>, vector<1x128xf32>
    %172 = vector.broadcast %171 : vector<1x128xf32> to vector<8x128xf32>
    %173 = arith.addf %170, %172 : vector<8x128xf32>
    %174 = arith.truncf %173 : vector<8x128xf32> to vector<8x128xbf16>
    %c0_75 = arith.constant 0 : index
    %c0_76 = arith.constant 0 : index
    %175 = vector.load %arg7[%c0_75, %c0_76] : memref<8x128xbf16, #tpu.memory_space<vmem>>, vector<8x128xbf16>
    tpu.vector_store %arg7[%c0_75, %c0_76], %174 {strides = array<i32>} : memref<8x128xbf16, #tpu.memory_space<vmem>>, vector<8x128xbf16>,
    return
  }
}

</mosaic_0001>

<bundles_post_ra>
// kernel: _forward_padded.1
= control target key start
LH: loop header
LB: loop body
LE: loop exit
PB: predicated region body
PF: predicated region fallthrough
CT: control target
= control target key end

     0   :  { %12 = vsyncpa [#allocation3], 0  ;;  %s1761_s0 = inlined_call_operand.hbm [shape: s32[8,3], index: 0, kind: input, shape index: {}]   ;;  %s1762_s1 = inlined_call_operand.hbm [shape: bf16[128,128], index: 1, kind: input, shape index: {}]   ;;  %s1763_s2 = inlined_call_operand.hbm [shape: bf16[4,128,128], index: 2, kind: input, shape index: {}]   ;;  %s1764_s3 = inlined_call_operand.hbm [shape: bf16[128,128], index: 3, kind: input, shape index: {}]   ;;  %s1765_s4 = inlined_call_operand.hbm [shape: f32[5,1,128], index: 4, kind: input, shape index: {}]   ;;  %s1766_s5 = inlined_call_operand.hbm [shape: f32[5,1,128], index: 5, kind: input, shape index: {}]   ;;  %s1767_s6 = inlined_call_operand.hbm [shape: f32[1,128], index: 6, kind: input, shape index: {}]   ;;  %s1768_s7 = inlined_call_operand.hbm [shape: bf16[8,128], index: 7, kind: output, shape index: {}]  }
   0x1   :  { %13 = vsyncpa [#allocation6], 0 }
   0x2   :  { %14 = vsyncpa [#allocation9], 0 }
   0x3   :  { %15 = vsyncpa [#allocation12], 0 }
   0x4   :  { %16 = vsyncpa [#allocation4], 0  ;;  %s1505_s24 = smov [#allocation5]   ;;  %s1319_s28 = scalar_lea.hbm %s1762_s1, 1024 }
   0x5   :  { %s32_s25 = sshll.u32 %s1505_s24, 4  ;;  %p1320_p0 = scmp.ne.s32.totalorder %s1762_s1, %s1319_s28  ;;  %s33_s25 = int_to_ptr.vmem [resolvable:$true] %s32_s25 }
   0x6   :  { %p1323_p1 = scmp.lt.u32.totalorder %s1319_s28, %s1762_s1 }
   0x8   :  { %p1325_p2 = pnand %p1323_p1, %p1320_p0 }
   0xa   :  { %1328 = shalt.err (!%p1325_p2)
}
   0xb   :  { %s1329_s10 = scalar_lea.vmem %s33_s25, 1024  ;;  %p1334_p4 = scmp.lt.s32.totalorder %s33_s25, %s33_s25 }
   0xc   :  { %p1330_p3 = scmp.ne.s32.totalorder %s33_s25, %s1329_s10  ;;  %p1335_p5 = scmp.lt.s32.totalorder %s1329_s10, %s1329_s10 }
   0xe   :  { %p1336_p6 = por %p1335_p5, %p1334_p4 }
  0x10   :  { %p1337_p7 = pnand %p1336_p6, %p1330_p3 }
  0x12   :  { %1340 = shalt.err (!%p1337_p7)
}
  0x13   :  { %s1506_s11 = smov 64   ;;  %s1507_s12 = smov 4  }
  0x14   :  { %38 = dma.hbm_to_vmem [thread:$0]  %s1762_s1, 1024, %s33_s25, [#allocation6], %s1506_s11, %s1506_s11, %s1507_s12  }
  0x15   :  { %s1508_s15 = smov [#allocation8]   ;;  %s1341_s19 = scalar_lea.hbm %s1764_s3, 1024 }
  0x16   :  { %s56_s16 = sshll.u32 %s1508_s15, 4  ;;  %p1342_p8 = scmp.ne.s32.totalorder %s1764_s3, %s1341_s19  ;;  %s57_s16 = int_to_ptr.vmem [resolvable:$true] %s56_s16 }
  0x17   :  { %p1345_p9 = scmp.lt.u32.totalorder %s1341_s19, %s1764_s3 }
  0x19   :  { %p1347_p10 = pnand %p1345_p9, %p1342_p8 }
  0x1b   :  { %1350 = shalt.err (!%p1347_p10)
}
  0x1c   :  { %s1351_s24 = scalar_lea.vmem %s57_s16, 1024  ;;  %p1356_p12 = scmp.lt.s32.totalorder %s57_s16, %s57_s16 }
  0x1d   :  { %p1352_p11 = scmp.ne.s32.totalorder %s57_s16, %s1351_s24  ;;  %p1357_p13 = scmp.lt.s32.totalorder %s1351_s24, %s1351_s24 }
  0x1f   :  { %p1358_p0 = por %p1357_p13, %p1356_p12 }
  0x21   :  { %p1359_p1 = pnand %p1358_p0, %p1352_p11 }
  0x23   :  { %1362 = shalt.err (!%p1359_p1)
}
  0x24   :  { %62 = dma.hbm_to_vmem [thread:$0]  %s1764_s3, 1024, %s57_s16, [#allocation9], %s1506_s11, %s1506_s11, %s1507_s12  }
  0x25   :  { %s1509_s26 = smov [#allocation11]   ;;  %s1510_s28 = smov [#allocation2]  }
  0x26   :  { %s80_s27 = sshll.u32 %s1509_s26, 4  ;;  %s23_s29 = sshll.u32 %s1510_s28, 4  ;;  %s81_s27 = int_to_ptr.vmem [resolvable:$true] %s80_s27  ;;  %s1593_s29 = int_to_ptr.vmem [resolvable:$true] %s23_s29 }
  0x27   :  { %s1363_s9 = scalar_lea.hbm %s1766_s5, 80 }
  0x28   :  { %p1364_p2 = scmp.ne.s32.totalorder %s1766_s5, %s1363_s9  ;;  %p1367_p3 = scmp.lt.u32.totalorder %s1363_s9, %s1766_s5 }
  0x2a   :  { %p1369_p4 = pnand %p1367_p3, %p1364_p2 }
  0x2c   :  { %1372 = shalt.err (!%p1369_p4)
}
  0x2d   :  { %s1373_s3 = scalar_lea.vmem %s81_s27, 80  ;;  %s1377_s16 = scalar_lea.vmem %s81_s27, 96 }
  0x2e   :  { %p1374_p5 = scmp.ne.s32.totalorder %s81_s27, %s1373_s3  ;;  %p1378_p6 = scmp.lt.s32.totalorder %s81_s27, %s81_s27 }
  0x2f   :  { %p1379_p7 = scmp.lt.s32.totalorder %s1377_s16, %s1373_s3 }
  0x31   :  { %p1380_p8 = por %p1379_p7, %p1378_p6 }
  0x33   :  { %p1381_p9 = pnand %p1380_p8, %p1374_p5 }
  0x35   :  { %1384 = shalt.err (!%p1381_p9)
}
  0x36   :  { %s1511_s17 = smov 16   ;;  %s1512_s18 = smov 1  }
  0x37   :  { %86 = dma.hbm_to_vmem [thread:$0]  %s1766_s5, 80, %s81_s27, [#allocation12], %s1511_s17, %s1511_s17, %s1512_s18  }
  0x38   :  { %s1385_s23 = scalar_lea.hbm %s1761_s0, 128 }
  0x39   :  { %p1386_p10 = scmp.ne.s32.totalorder %s1761_s0, %s1385_s23  ;;  %p1389_p11 = scmp.lt.u32.totalorder %s1385_s23, %s1761_s0 }
  0x3b   :  { %p1391_p12 = pnand %p1389_p11, %p1386_p10 }
  0x3d   :  { %1394 = shalt.err (!%p1391_p12)
}
  0x3e   :  { %s1395_s28 = scalar_lea.vmem %s1593_s29, 128  ;;  %p1400_p0 = scmp.lt.s32.totalorder %s1593_s29, %s1593_s29 }
  0x3f   :  { %p1396_p13 = scmp.ne.s32.totalorder %s1593_s29, %s1395_s28  ;;  %p1401_p1 = scmp.lt.s32.totalorder %s1395_s28, %s1395_s28 }
  0x41   :  { %p1402_p2 = por %p1401_p1, %p1400_p0 }
  0x43   :  { %p1403_p3 = pnand %p1402_p2, %p1396_p13 }
  0x45   :  { %1406 = shalt.err (!%p1403_p3)
}
  0x46   :  { %26 = dma.hbm_to_vmem [thread:$0]  %s1761_s0, 128, %s1593_s29, [#allocation3]  }
  0x47   :  { %s1513_s30 = smov [#allocation7]   ;;  %s1514_s9 = smov [#allocation10]  }
  0x48   :  { %s44_s8 = sshll.u32 %s1513_s30, 4  ;;  %s68_s10 = sshll.u32 %s1514_s9, 4  ;;  %s45_s8 = int_to_ptr.vmem [resolvable:$true] %s44_s8  ;;  %s1627_s10 = int_to_ptr.vmem [resolvable:$true] %s68_s10 }
  0x49   :  { %s1407_s15 = scalar_lea.hbm %s1763_s2, 4096 }
  0x4a   :  { %p1408_p4 = scmp.ne.s32.totalorder %s1763_s2, %s1407_s15  ;;  %p1411_p5 = scmp.lt.u32.totalorder %s1407_s15, %s1763_s2 }
  0x4c   :  { %p1413_p6 = pnand %p1411_p5, %p1408_p4 }
  0x4e   :  { %1416 = shalt.err (!%p1413_p6)
}
  0x4f   :  { %s1417_s0 = scalar_lea.vmem %s45_s8, 4096  ;;  %p1422_p8 = scmp.lt.s32.totalorder %s45_s8, %s45_s8 }
  0x50   :  { %p1418_p7 = scmp.ne.s32.totalorder %s45_s8, %s1417_s0  ;;  %p1423_p9 = scmp.lt.s32.totalorder %s1417_s0, %s1417_s0 }
  0x52   :  { %p1424_p10 = por %p1423_p9, %p1422_p8 }
  0x54   :  { %p1425_p11 = pnand %p1424_p10, %p1418_p7 }
  0x56   :  { %1428 = shalt.err (!%p1425_p11)
}
  0x57   :  { %50 = dma.hbm_to_vmem [thread:$0]  %s1763_s2, 4096, %s45_s8, [#allocation6], %s1506_s11, %s1506_s11, %s1507_s12  }
  0x58   :  { %s1429_s24 = scalar_lea.hbm %s1765_s4, 80 }
  0x59   :  { %p1430_p12 = scmp.ne.s32.totalorder %s1765_s4, %s1429_s24  ;;  %p1433_p13 = scmp.lt.u32.totalorder %s1429_s24, %s1765_s4 }
  0x5b   :  { %p1435_p0 = pnand %p1433_p13, %p1430_p12 }
  0x5d   :  { %1438 = shalt.err (!%p1435_p0)
}
  0x5e   :  { %s1439_s5 = scalar_lea.vmem %s1627_s10, 80  ;;  %s1443_s2 = scalar_lea.vmem %s1627_s10, 96 }
  0x5f   :  { %p1440_p1 = scmp.ne.s32.totalorder %s1627_s10, %s1439_s5  ;;  %p1444_p2 = scmp.lt.s32.totalorder %s1627_s10, %s1627_s10 }
  0x60   :  { %p1445_p3 = scmp.lt.s32.totalorder %s1443_s2, %s1439_s5 }
  0x62   :  { %p1446_p4 = por %p1445_p3, %p1444_p2 }
  0x64   :  { %p1447_p5 = pnand %p1446_p4, %p1440_p1 }
  0x66   :  { %1450 = shalt.err (!%p1447_p5)
}
  0x67   :  { %74 = dma.hbm_to_vmem [thread:$0]  %s1765_s4, 80, %s1627_s10, [#allocation9], %s1511_s17, %s1511_s17, %s1512_s18  }
  0x68   :  { %s1515_s27 = smov [#allocation13]   ;;  %s1451_s13 = scalar_lea.hbm %s1767_s6, 16 }
  0x69   :  { %s93_s30 = sshll.u32 %s1515_s27, 4  ;;  %p1452_p6 = scmp.ne.s32.totalorder %s1767_s6, %s1451_s13  ;;  %s94_s30 = int_to_ptr.vmem [resolvable:$true] %s93_s30 }
  0x6a   :  { %p1455_p7 = scmp.lt.u32.totalorder %s1451_s13, %s1767_s6 }
  0x6c   :  { %p1457_p8 = pnand %p1455_p7, %p1452_p6 }
  0x6e   :  { %1460 = shalt.err (!%p1457_p8)
}
  0x6f   :  { %s1461_s19 = scalar_lea.vmem %s94_s30, 16  ;;  %s1465_s4 = scalar_lea.vmem %s94_s30, 32 }
  0x70   :  { %p1462_p9 = scmp.ne.s32.totalorder %s94_s30, %s1461_s19  ;;  %p1466_p10 = scmp.lt.s32.totalorder %s94_s30, %s94_s30 }
  0x71   :  { %p1467_p11 = scmp.lt.s32.totalorder %s1465_s4, %s1461_s19 }
  0x73   :  { %p1468_p12 = por %p1467_p11, %p1466_p10 }
  0x75   :  { %p1469_p13 = pnand %p1468_p12, %p1462_p9 }
  0x77   :  { %1472 = shalt.err (!%p1469_p13)
}
  0x78   :  { %96 = dma.hbm_to_vmem [thread:$0]  %s1767_s6, 16, %s94_s30, [#allocation12]  }
  0x79   :  { %1495 = dma.done.wait [#allocation3], 128  }
  0x7a   :  { %1496 = vsyncadd [#allocation3], 4294967168 }
  0x7b   :  { %1497 = dma.done.wait [#allocation6], 5120  }
  0x7c   :  { %1498 = vsyncadd [#allocation6], 4294962176 }
  0x7d   :  { %1499 = dma.done.wait [#allocation9], 1104  }
  0x7e   :  { %1500 = vsyncadd [#allocation9], 4294966192 }
  0x7f   :  { %1501 = dma.done.wait [#allocation12], 96  }
  0x80   :  { %1502 = vsyncadd [#allocation12], 4294967200  ;;  %v1516_v0 = vmov 0   ;;  %v1517_v1 = vmov 2   ;;  %v1518_v2 = vmov 0.0   ;;  %v119_v3 = vld [vmem:[#allocation2] sm:$0xff]  ;;  %v120_v15 = vlaneseq }
  0x81   :  { %1247 = vset.pattern.permute.xlu0 %v1516_v0  ;;  %1249 = vset.pattern.permute.xlu1 %v1517_v1  ;;  %v126_v4 = vadd.s32 26, %v119_v3  ;;  %v132_v5 = vadd.s32 52, %v119_v3  ;;  %v1251_v6 = vld [vmem:[#allocation5] sm:$0xff]   ;;  %v1252_v7 = vld [vmem:[#allocation5 + $0x8] sm:$0xff]   ;;  %v1519_v8 = vmov 1   ;;  %v1253_v9 = vld [vmem:[#allocation5 + $0x10] sm:$0xff]  }
  0x82   :  { %1109 = vmatprep.subr.bf16.mxu0 %v1518_v2  ;;  %1129 = vmatprep.subr.bf16.mxu1 %v1518_v2  ;;  %v1254_v10 = vld [vmem:[#allocation5 + $0x18] sm:$0xff]   ;;  %vm1520_vm0 = vmmov 0   ;;  %v1255_v11 = vld [vmem:[#allocation5 + $0x20] sm:$0xff]   ;;  %v1256_v12 = vld [vmem:[#allocation5 + $0x28] sm:$0xff]   ;;  %v121_v17 = vand.u32 127, %v120_v15  ;;  %v271_v51 = vshrl.u32 %v120_v15, 7 }
  0x83   :  { %123 = vperm.xlu0 %1247, %v119_v3   ;;  %134 = vperm.xlu1 %1249, %v132_v5   ;;  %v1257_v13 = vld [vmem:[#allocation5 + $0x30] sm:$0xff]   ;;  %v1258_v14 = vld [vmem:[#allocation5 + $0x38] sm:$0xff]   ;;  %v1521_v20 = vmov 1.0|1.0   ;;  %v1259_v21 = vld [vmem:[#allocation7] sm:$0xff]   ;;  %s1522_s6 = smov [#allocation14]  }
  0x84   :  { %1110 = vmatpush3.bf16.msra.mxu0 %v1251_v6  ;;  %1125 = vmatprep.mubr.msk.bf16.mxu0 %vm1520_vm0, %v1518_v2  ;;  %v1260_v22 = vld [vmem:[#allocation7 + $0x8] sm:$0xff]   ;;  %v1261_v23 = vld [vmem:[#allocation7 + $0x10] sm:$0xff]   ;;  %v1262_v24 = vld [vmem:[#allocation7 + $0x18] sm:$0xff]   ;;  %v1701_v53 = vsub.s32 0, %v271_v51  ;;  %s991_s10 = sshll.u32 %s1522_s6, 4  ;;  %s992_s10 = int_to_ptr.vmem [resolvable:$true] %s991_s10 }
  0x85   :  { %1111 = vmatprep.subr.bf16.mxu0 %v1518_v2  ;;  %1145 = vmatprep.mubr.msk.bf16.mxu1 %vm1520_vm0, %v1518_v2  ;;  %v1263_v25 = vld [vmem:[#allocation7 + $0x20] sm:$0xff]   ;;  %v1264_v26 = vld [vmem:[#allocation7 + $0x28] sm:$0xff]   ;;  %v1265_v27 = vld [vmem:[#allocation7 + $0x30] sm:$0xff]   ;;  %s1473_s20 = scalar_lea.vmem %s992_s10, 64  ;;  %p1478_p1 = scmp.lt.s32.totalorder %s992_s10, %s992_s10 }
  0x86   :  { %1130 = vmatpush3.bf16.msra.mxu1 %v1259_v21  ;;  %v1266_v28 = vld [vmem:[#allocation7 + $0x38] sm:$0xff]   ;;  %v262_v52 = vld [vmem:[#allocation10] sm:$0x1]  ;;  %v266_v56 = vld [vmem:[#allocation11] sm:$0x1]  ;;  %p1474_p0 = scmp.ne.s32.totalorder %s992_s10, %s1473_s20  ;;  %p1479_p2 = scmp.lt.s32.totalorder %s1473_s20, %s1473_s20 }
  0x87   :  { %1248 = vset.pattern.permute.xlu0 %v1519_v8  ;;  %1131 = vmatprep.subr.bf16.mxu1 %v1518_v2  ;;  %v1268_v3 = vld [vmem:[#allocation7 + $0x48] sm:$0xff]   ;;  %v1270_v5 = vld [vmem:[#allocation7 + $0x58] sm:$0xff]   ;;  %v1271_v6 = vld [vmem:[#allocation7 + $0x60] sm:$0xff]  }
  0x88   :  { %128 = vperm.xlu0 %1248, %v126_v4   ;;  %1112 = vmatpush3.bf16.msra.mxu0 %v1252_v7  ;;  %v1269_v4 = vld [vmem:[#allocation7 + $0x50] sm:$0xff]   ;;  %v1272_v7 = vld [vmem:[#allocation7 + $0x68] sm:$0xff]   ;;  %v1282_v51 = vld [vmem:[#allocation7 + $0xb8] sm:$0xff]   ;;  %p1480_p3 = por %p1479_p2, %p1478_p1 }
  0x89   :  { %1113 = vmatprep.subr.bf16.mxu0 %v1518_v2  ;;  %v1273_v8 = vld [vmem:[#allocation7 + $0x70] sm:$0xff]  }
  0x8a   :  { %1132 = vmatpush3.bf16.msra.mxu1 %v1260_v22  ;;  %p1481_p4 = pnand %p1480_p3, %p1474_p0 }
  0x8b   :  { %1133 = vmatprep.subr.bf16.mxu1 %v1518_v2 }
  0x8c   :  { %1250 = vset.pattern.permute.xlu0 %v1517_v1  ;;  %1114 = vmatpush3.bf16.msra.mxu0 %v1253_v9  ;;  %v1267_v1 = vld [vmem:[#allocation7 + $0x40] sm:$0xff]   ;;  %v1274_v9 = vld [vmem:[#allocation7 + $0x78] sm:$0xff]  }
  0x8d   :  { %1115 = vmatprep.subr.bf16.mxu0 %v1518_v2 }
  0x8e   :  { %1134 = vmatpush3.bf16.msra.mxu1 %v1261_v23 }
  0x8f   :  { %1135 = vmatprep.subr.bf16.mxu1 %v1518_v2 }
  0x90   :  { %1116 = vmatpush3.bf16.msra.mxu0 %v1254_v10 }
  0x91   :  { %1117 = vmatprep.subr.bf16.mxu0 %v1518_v2 }
  0x92   :  { %1136 = vmatpush3.bf16.msra.mxu1 %v1262_v24 }
  0x93   :  { %1137 = vmatprep.subr.bf16.mxu1 %v1518_v2 }
  0x94   :  { %1118 = vmatpush3.bf16.msra.mxu0 %v1255_v11 }
  0x95   :  { %1119 = vmatprep.subr.bf16.mxu0 %v1518_v2 }
  0x96   :  { %1138 = vmatpush3.bf16.msra.mxu1 %v1263_v25 }
  0x97   :  { %1139 = vmatprep.subr.bf16.mxu1 %v1518_v2 }
  0x98   :  { %1120 = vmatpush3.bf16.msra.mxu0 %v1256_v12 }
  0x99   :  { %1121 = vmatprep.subr.bf16.mxu0 %v1518_v2 }
  0x9a   :  { %1140 = vmatpush3.bf16.msra.mxu1 %v1264_v26 }
  0x9b   :  { %1141 = vmatprep.subr.bf16.mxu1 %v1518_v2 }
  0x9c   :  { %1122 = vmatpush3.bf16.msra.mxu0 %v1257_v13 }
  0x9d   :  { %1123 = vmatprep.subr.bf16.mxu0 %v1518_v2 }
  0x9e   :  { %1142 = vmatpush3.bf16.msra.mxu1 %v1265_v27 }
  0x9f   :  { %1143 = vmatprep.subr.bf16.mxu1 %v1518_v2 }
  0xa0   :  { %1124 = vmatpush3.bf16.msra.mxu0 %v1258_v14 }
  0xa1   :  { %1149 = vmatprep.subr.bf16.mxu0 %v1518_v2 }
  0xa2   :  { %1144 = vmatpush3.bf16.msra.mxu1 %v1266_v28 }
  0xa3   :  { %1169 = vmatprep.subr.bf16.mxu1 %v1518_v2 }
 0x102   :  { %v124_v16 = vpop.permute.xlu0 %123  ;;  %v135_v18 = vpop.permute.xlu1 %134 }
 0x103   :  { %vm136_vm1 = vcmp.eq.s32.totalorder %v135_v18, %v121_v17  ;;  %vm125_vm2 = vcmp.eq.s32.totalorder %v124_v16, %v121_v17 }
 0x107   :  { %v129_v19 = vpop.permute.xlu0 %128 }
 0x108   :  { %vm130_vm3 = vcmp.eq.s32.totalorder %v129_v19, %v121_v17 }
 0x109   :  { %vm131_vm4 = vmor %vm125_vm2, %vm130_vm3 }
 0x10a   :  { %vm137_vm5 = vmor %vm131_vm4, %vm136_vm1 }
 0x10b   :  { %vm1012_vm6 = vmpackc.low %vm137_vm5, %vm137_vm5 }
 0x10c   :  { %1126 = vmatmul.mubr.msk.bf16.vlgmr.msra.gmra.mrb[0].mxu0 %vm1012_vm6, %v1521_v20 }
 0x10d   :  { %1165 = vmatprep.mubr.msk.bf16.mxu0 %vm1520_vm0, %v1518_v2  ;;  %1150 = vmatpush3.bf16.msra.mxu0 %v1267_v1 }
 0x10e   :  { %1151 = vmatprep.subr.bf16.mxu0 %v1518_v2 }
 0x111   :  { %1152 = vmatpush3.bf16.msra.mxu0 %v1268_v3 }
 0x112   :  { %1153 = vmatprep.subr.bf16.mxu0 %v1518_v2 }
 0x115   :  { %1154 = vmatpush3.bf16.msra.mxu0 %v1269_v4 }
 0x116   :  { %1155 = vmatprep.subr.bf16.mxu0 %v1518_v2 }
 0x119   :  { %1156 = vmatpush3.bf16.msra.mxu0 %v1270_v5 }
 0x11a   :  { %1157 = vmatprep.subr.bf16.mxu0 %v1518_v2 }
 0x11d   :  { %1158 = vmatpush3.bf16.msra.mxu0 %v1271_v6 }
 0x11e   :  { %1159 = vmatprep.subr.bf16.mxu0 %v1518_v2 }
 0x121   :  { %1160 = vmatpush3.bf16.msra.mxu0 %v1272_v7 }
 0x122   :  { %1161 = vmatprep.subr.bf16.mxu0 %v1518_v2 }
 0x125   :  { %1162 = vmatpush3.bf16.msra.mxu0 %v1273_v8 }
 0x126   :  { %1163 = vmatprep.subr.bf16.mxu0 %v1518_v2 }
 0x129   :  { %1164 = vmatpush3.bf16.msra.mxu0 %v1274_v9 }
 0x12a   :  { %1189 = vmatprep.subr.bf16.mxu0 %v1518_v2 }
 0x1df   :  { %v239_v29 = vpop.f32.mrb[0].mxu0 }
 0x1e0   :  { %v245_v30 = vrot.slane %v239_v29, 4  ;;  %v251_v31 = vmul.f32 %v239_v29, %v239_v29  ;;  %v1127_v32 = vpop.f32.mrb[1].mxu0 }
 0x1e1   :  { %v242_v33 = vpop.f32.mrb[2].mxu0  ;;  %v407_v32 = vld [vmem:[#allocation10 + $0x1] sm:$0x1] }
 0x1e2   :  { %v246_v34 = vadd.f32 %v245_v30, %v239_v29  ;;  %v252_v35 = vrot.slane %v251_v31, 4  ;;  %v1128_v36 = vpop.f32.mrb[3].mxu0 }
 0x1e4   :  { %v247_v37 = vrot.slane %v246_v34, 2  ;;  %v253_v38 = vadd.f32 %v252_v35, %v251_v31  ;;  %v412_v35 = vld [vmem:[#allocation11 + $0x1] sm:$0x1] }
 0x1e6   :  { %v248_v39 = vadd.f32 %v247_v37, %v246_v34  ;;  %v254_v40 = vrot.slane %v253_v38, 2 }
 0x1e8   :  { %v249_v41 = vrot.slane %v248_v39, 1  ;;  %v255_v42 = vadd.f32 %v254_v40, %v253_v38 }
 0x1ea   :  { %v250_v43 = vadd.f32 %v249_v41, %v248_v39  ;;  %v256_v44 = vrot.slane %v255_v42, 1 }
 0x1ec   :  { %v257_v45 = vadd.f32 %v256_v44, %v255_v42  ;;  %v258_v46 = vmul.f32 0.125, %v250_v43  ;;  %v1275_v44 = vld [vmem:[#allocation7 + $0x80] sm:$0xff]  }
 0x1ee   :  { %v259_v47 = vmul.f32 0.125, %v257_v45  ;;  %v260_v48 = vmul.f32 %v258_v46, %v258_v46  ;;  %v1276_v45 = vld [vmem:[#allocation7 + $0x88] sm:$0xff]  }
 0x1f0   :  { %v261_v49 = vsub.f32 %v259_v47, %v260_v48  ;;  %v1278_v47 = vld [vmem:[#allocation7 + $0x98] sm:$0xff]   ;;  %v1279_v48 = vld [vmem:[#allocation7 + $0xa0] sm:$0xff]  }
 0x1f2   :  { %v263_v50 = vadd.f32 1e-05, %v261_v49  ;;  %v1280_v49 = vld [vmem:[#allocation7 + $0xa8] sm:$0xff]  }
 0x1f4   :  { %1299 = vrsqrt.f32 %v263_v50  ;;  %v1281_v50 = vld [vmem:[#allocation7 + $0xb0] sm:$0xff]  }
 0x1fe   :  { %v1300_v54 = vpop.eup %1299 }
 0x1ff   :  { %v265_v55 = vmul.f32 %v1300_v54, %v262_v52 }
 0x201   :  { %v267_v57 = vmul.f32 %v265_v55, %v258_v46  ;;  %v273_v58 = vrot.slane %v265_v55, %v1701_v53  ;;  %v1277_v46 = vld [vmem:[#allocation7 + $0x90] sm:$0xff]  }
 0x203   :  { %v268_v59 = vsub.f32 %v266_v56, %v267_v57  ;;  %v275_v60 = vmul.f32 %v273_v58, %v239_v29 }
 0x205   :  { %v280_v61 = vrot.slane %v268_v59, %v1701_v53 }
 0x207   :  { %v282_v62 = vadd.f32 %v280_v61, %v275_v60 }
 0x209   :  { %1301 = vtanh.f32 %v282_v62 }
 0x213   :  { %v1302_v63 = vpop.eup %1301 }
 0x214   :  { %v284_v0 = vpack.c.bf16 %v1302_v63, %v1302_v63 }
 0x216   :  { %1146 = vmatmul.mubr.bf16.vlgmr.msra.gmra.mrb[0].mxu1 %v284_v0 }
 0x217   :  { %1185 = vmatprep.mubr.msk.bf16.mxu1 %vm1520_vm0, %v1518_v2  ;;  %1170 = vmatpush3.bf16.msra.mxu1 %v1275_v44 }
 0x218   :  { %1171 = vmatprep.subr.bf16.mxu1 %v1518_v2 }
 0x21b   :  { %1172 = vmatpush3.bf16.msra.mxu1 %v1276_v45 }
 0x21c   :  { %1173 = vmatprep.subr.bf16.mxu1 %v1518_v2 }
 0x21f   :  { %1174 = vmatpush3.bf16.msra.mxu1 %v1277_v46 }
 0x220   :  { %1175 = vmatprep.subr.bf16.mxu1 %v1518_v2 }
 0x223   :  { %1176 = vmatpush3.bf16.msra.mxu1 %v1278_v47 }
 0x224   :  { %1177 = vmatprep.subr.bf16.mxu1 %v1518_v2 }
 0x227   :  { %1178 = vmatpush3.bf16.msra.mxu1 %v1279_v48 }
 0x228   :  { %1179 = vmatprep.subr.bf16.mxu1 %v1518_v2 }
 0x22b   :  { %1180 = vmatpush3.bf16.msra.mxu1 %v1280_v49 }
 0x22c   :  { %1181 = vmatprep.subr.bf16.mxu1 %v1518_v2 }
 0x22f   :  { %1182 = vmatpush3.bf16.msra.mxu1 %v1281_v50 }
 0x230   :  { %1183 = vmatprep.subr.bf16.mxu1 %v1518_v2 }
 0x233   :  { %1184 = vmatpush3.bf16.msra.mxu1 %v1282_v51 }
 0x234   :  { %1209 = vmatprep.subr.bf16.mxu1 %v1518_v2 }
 0x2e9   :  { %v383_v10 = vpop.f32.mrb[0].mxu1 }
 0x2ea   :  { %v389_v11 = vrot.slane %v383_v10, 4  ;;  %v395_v12 = vmul.f32 %v383_v10, %v383_v10  ;;  %v1147_v13 = vpop.f32.mrb[1].mxu1 }
 0x2eb   :  { %v386_v14 = vpop.f32.mrb[2].mxu1 }
 0x2ec   :  { %v390_v15 = vadd.f32 %v389_v11, %v383_v10  ;;  %v396_v16 = vrot.slane %v395_v12, 4  ;;  %v1148_v17 = vpop.f32.mrb[3].mxu1 }
 0x2ee   :  { %v391_v18 = vrot.slane %v390_v15, 2  ;;  %v397_v19 = vadd.f32 %v396_v16, %v395_v12  ;;  %v554_v12 = vld [vmem:[#allocation10 + $0x2] sm:$0x1] }
 0x2f0   :  { %v392_v20 = vadd.f32 %v391_v18, %v390_v15  ;;  %v398_v21 = vrot.slane %v397_v19, 2  ;;  %v559_v15 = vld [vmem:[#allocation11 + $0x2] sm:$0x1] }
 0x2f2   :  { %v393_v22 = vrot.slane %v392_v20, 1  ;;  %v399_v23 = vadd.f32 %v398_v21, %v397_v19 }
 0x2f4   :  { %v394_v24 = vadd.f32 %v393_v22, %v392_v20  ;;  %v400_v25 = vrot.slane %v399_v23, 1 }
 0x2f6   :  { %v401_v26 = vadd.f32 %v400_v25, %v399_v23  ;;  %v402_v27 = vmul.f32 0.125, %v394_v24  ;;  %v1283_v24 = vld [vmem:[#allocation7 + $0xc0] sm:$0xff]   ;;  %v1284_v25 = vld [vmem:[#allocation7 + $0xc8] sm:$0xff]  }
 0x2f8   :  { %v403_v28 = vmul.f32 0.125, %v401_v26  ;;  %v404_v29 = vmul.f32 %v402_v27, %v402_v27  ;;  %v1285_v26 = vld [vmem:[#allocation7 + $0xd0] sm:$0xff]  }
 0x2fa   :  { %v405_v30 = vsub.f32 %v403_v28, %v404_v29  ;;  %v1287_v28 = vld [vmem:[#allocation7 + $0xe0] sm:$0xff]   ;;  %v1288_v29 = vld [vmem:[#allocation7 + $0xe8] sm:$0xff]  }
 0x2fc   :  { %v408_v31 = vadd.f32 1e-05, %v405_v30  ;;  %v1289_v30 = vld [vmem:[#allocation7 + $0xf0] sm:$0xff]  }
 0x2fe   :  { %1303 = vrsqrt.f32 %v408_v31  ;;  %v1290_v31 = vld [vmem:[#allocation7 + $0xf8] sm:$0xff]  }
 0x308   :  { %v1304_v33 = vpop.eup %1303 }
 0x309   :  { %v410_v34 = vmul.f32 %v1304_v33, %v407_v32 }
 0x30b   :  { %v413_v36 = vmul.f32 %v410_v34, %v402_v27  ;;  %v419_v37 = vrot.slane %v410_v34, %v1701_v53  ;;  %v1286_v27 = vld [vmem:[#allocation7 + $0xd8] sm:$0xff]  }
 0x30d   :  { %v414_v38 = vsub.f32 %v412_v35, %v413_v36  ;;  %v421_v39 = vmul.f32 %v419_v37, %v383_v10 }
 0x30f   :  { %v426_v40 = vrot.slane %v414_v38, %v1701_v53 }
 0x311   :  { %v428_v41 = vadd.f32 %v426_v40, %v421_v39 }
 0x313   :  { %1305 = vtanh.f32 %v428_v41 }
 0x31d   :  { %v1306_v42 = vpop.eup %1305 }
 0x31e   :  { %v430_v43 = vpack.c.bf16 %v1306_v42, %v1306_v42 }
 0x320   :  { %1166 = vmatmul.mubr.bf16.vlgmr.msra.gmra.mrb[4].mxu0 %v430_v43 }
 0x321   :  { %1205 = vmatprep.mubr.msk.bf16.mxu0 %vm1520_vm0, %v1518_v2  ;;  %1190 = vmatpush3.bf16.msra.mxu0 %v1283_v24 }
 0x322   :  { %1191 = vmatprep.subr.bf16.mxu0 %v1518_v2 }
 0x325   :  { %1192 = vmatpush3.bf16.msra.mxu0 %v1284_v25 }
 0x326   :  { %1193 = vmatprep.subr.bf16.mxu0 %v1518_v2 }
 0x329   :  { %1194 = vmatpush3.bf16.msra.mxu0 %v1285_v26 }
 0x32a   :  { %1195 = vmatprep.subr.bf16.mxu0 %v1518_v2 }
 0x32d   :  { %1196 = vmatpush3.bf16.msra.mxu0 %v1286_v27 }
 0x32e   :  { %1197 = vmatprep.subr.bf16.mxu0 %v1518_v2 }
 0x331   :  { %1198 = vmatpush3.bf16.msra.mxu0 %v1287_v28 }
 0x332   :  { %1199 = vmatprep.subr.bf16.mxu0 %v1518_v2 }
 0x335   :  { %1200 = vmatpush3.bf16.msra.mxu0 %v1288_v29 }
 0x336   :  { %1201 = vmatprep.subr.bf16.mxu0 %v1518_v2 }
 0x339   :  { %1202 = vmatpush3.bf16.msra.mxu0 %v1289_v30 }
 0x33a   :  { %1203 = vmatprep.subr.bf16.mxu0 %v1518_v2 }
 0x33d   :  { %1204 = vmatpush3.bf16.msra.mxu0 %v1290_v31 }
 0x3f3   :  { %v530_v52 = vpop.f32.mrb[4].mxu0 }
 0x3f4   :  { %v536_v54 = vrot.slane %v530_v52, 4  ;;  %v542_v55 = vmul.f32 %v530_v52, %v530_v52  ;;  %v1167_v56 = vpop.f32.mrb[5].mxu0 }
 0x3f5   :  { %v533_v57 = vpop.f32.mrb[6].mxu0 }
 0x3f6   :  { %v537_v58 = vadd.f32 %v536_v54, %v530_v52  ;;  %v543_v59 = vrot.slane %v542_v55, 4  ;;  %v1168_v60 = vpop.f32.mrb[7].mxu0 }
 0x3f8   :  { %v538_v61 = vrot.slane %v537_v58, 2  ;;  %v544_v62 = vadd.f32 %v543_v59, %v542_v55  ;;  %v701_v55 = vld [vmem:[#allocation10 + $0x3] sm:$0x1] }
 0x3fa   :  { %v539_v63 = vadd.f32 %v538_v61, %v537_v58  ;;  %v545_v0 = vrot.slane %v544_v62, 2  ;;  %v706_v58 = vld [vmem:[#allocation11 + $0x3] sm:$0x1] }
 0x3fc   :  { %v540_v1 = vrot.slane %v539_v63, 1  ;;  %v546_v3 = vadd.f32 %v545_v0, %v544_v62 }
 0x3fe   :  { %v541_v4 = vadd.f32 %v540_v1, %v539_v63  ;;  %v547_v5 = vrot.slane %v546_v3, 1 }
 0x400   :  { %v548_v6 = vadd.f32 %v547_v5, %v546_v3  ;;  %v549_v7 = vmul.f32 0.125, %v541_v4  ;;  %v1291_v4 = vld [vmem:[#allocation8] sm:$0xff]   ;;  %v1292_v5 = vld [vmem:[#allocation8 + $0x8] sm:$0xff]  }
 0x402   :  { %v550_v8 = vmul.f32 0.125, %v548_v6  ;;  %v551_v9 = vmul.f32 %v549_v7, %v549_v7  ;;  %v1293_v6 = vld [vmem:[#allocation8 + $0x10] sm:$0xff]  }
 0x404   :  { %v552_v10 = vsub.f32 %v550_v8, %v551_v9  ;;  %v1295_v8 = vld [vmem:[#allocation8 + $0x20] sm:$0xff]   ;;  %v1296_v9 = vld [vmem:[#allocation8 + $0x28] sm:$0xff]  }
 0x406   :  { %v555_v11 = vadd.f32 1e-05, %v552_v10  ;;  %v1297_v10 = vld [vmem:[#allocation8 + $0x30] sm:$0xff]  }
 0x408   :  { %1307 = vrsqrt.f32 %v555_v11  ;;  %v1298_v11 = vld [vmem:[#allocation8 + $0x38] sm:$0xff]  }
 0x412   :  { %v1308_v13 = vpop.eup %1307 }
 0x413   :  { %v557_v14 = vmul.f32 %v1308_v13, %v554_v12 }
 0x415   :  { %v560_v16 = vmul.f32 %v557_v14, %v549_v7  ;;  %v566_v17 = vrot.slane %v557_v14, %v1701_v53  ;;  %v1294_v7 = vld [vmem:[#allocation8 + $0x18] sm:$0xff]  }
 0x417   :  { %v561_v18 = vsub.f32 %v559_v15, %v560_v16  ;;  %v568_v19 = vmul.f32 %v566_v17, %v530_v52 }
 0x419   :  { %v573_v20 = vrot.slane %v561_v18, %v1701_v53 }
 0x41b   :  { %v575_v21 = vadd.f32 %v573_v20, %v568_v19 }
 0x41d   :  { %1309 = vtanh.f32 %v575_v21 }
 0x427   :  { %v1310_v22 = vpop.eup %1309 }
 0x428   :  { %v577_v23 = vpack.c.bf16 %v1310_v22, %v1310_v22 }
 0x42a   :  { %1186 = vmatmul.mubr.bf16.vlgmr.msra.gmra.mrb[4].mxu1 %v577_v23 }
 0x42b   :  { %1225 = vmatprep.mubr.msk.bf16.mxu1 %vm1520_vm0, %v1518_v2  ;;  %1210 = vmatpush3.bf16.msra.mxu1 %v1291_v4 }
 0x42c   :  { %1211 = vmatprep.subr.bf16.mxu1 %v1518_v2 }
 0x42f   :  { %1212 = vmatpush3.bf16.msra.mxu1 %v1292_v5 }
 0x430   :  { %1213 = vmatprep.subr.bf16.mxu1 %v1518_v2 }
 0x433   :  { %1214 = vmatpush3.bf16.msra.mxu1 %v1293_v6 }
 0x434   :  { %1215 = vmatprep.subr.bf16.mxu1 %v1518_v2 }
 0x437   :  { %1216 = vmatpush3.bf16.msra.mxu1 %v1294_v7 }
 0x438   :  { %1217 = vmatprep.subr.bf16.mxu1 %v1518_v2 }
 0x43b   :  { %1218 = vmatpush3.bf16.msra.mxu1 %v1295_v8 }
 0x43c   :  { %1219 = vmatprep.subr.bf16.mxu1 %v1518_v2 }
 0x43f   :  { %1220 = vmatpush3.bf16.msra.mxu1 %v1296_v9 }
 0x440   :  { %1221 = vmatprep.subr.bf16.mxu1 %v1518_v2 }
 0x443   :  { %1222 = vmatpush3.bf16.msra.mxu1 %v1297_v10 }
 0x444   :  { %1223 = vmatprep.subr.bf16.mxu1 %v1518_v2 }
 0x447   :  { %1224 = vmatpush3.bf16.msra.mxu1 %v1298_v11 }
 0x4fd   :  { %v677_v32 = vpop.f32.mrb[4].mxu1 }
 0x4fe   :  { %v683_v33 = vrot.slane %v677_v32, 4  ;;  %v689_v34 = vmul.f32 %v677_v32, %v677_v32  ;;  %v1187_v35 = vpop.f32.mrb[5].mxu1 }
 0x4ff   :  { %v680_v36 = vpop.f32.mrb[6].mxu1 }
 0x500   :  { %v684_v37 = vadd.f32 %v683_v33, %v677_v32  ;;  %v690_v38 = vrot.slane %v689_v34, 4  ;;  %v1188_v39 = vpop.f32.mrb[7].mxu1  ;;  %v848_v33 = vld [vmem:[#allocation10 + $0x4] sm:$0x1]  ;;  %v853_v36 = vld [vmem:[#allocation11 + $0x4] sm:$0x1] }
 0x502   :  { %v685_v40 = vrot.slane %v684_v37, 2  ;;  %v691_v41 = vadd.f32 %v690_v38, %v689_v34 }
 0x504   :  { %v686_v42 = vadd.f32 %v685_v40, %v684_v37  ;;  %v692_v43 = vrot.slane %v691_v41, 2 }
 0x506   :  { %v687_v44 = vrot.slane %v686_v42, 1  ;;  %v693_v45 = vadd.f32 %v692_v43, %v691_v41 }
 0x508   :  { %v688_v46 = vadd.f32 %v687_v44, %v686_v42  ;;  %v694_v47 = vrot.slane %v693_v45, 1 }
 0x50a   :  { %v695_v48 = vadd.f32 %v694_v47, %v693_v45  ;;  %v696_v49 = vmul.f32 0.125, %v688_v46  ;;  %v1046_v45 = vld [vmem:[#allocation13] ss:$0 sm:$0xff] }
 0x50c   :  { %v697_v50 = vmul.f32 0.125, %v695_v48  ;;  %v698_v51 = vmul.f32 %v696_v49, %v696_v49 }
 0x50e   :  { %v699_v52 = vsub.f32 %v697_v50, %v698_v51 }
 0x510   :  { %v702_v54 = vadd.f32 1e-05, %v699_v52 }
 0x512   :  { %1311 = vrsqrt.f32 %v702_v54 }
 0x51c   :  { %v1312_v56 = vpop.eup %1311 }
 0x51d   :  { %v704_v57 = vmul.f32 %v1312_v56, %v701_v55 }
 0x51f   :  { %v707_v59 = vmul.f32 %v704_v57, %v696_v49  ;;  %v713_v60 = vrot.slane %v704_v57, %v1701_v53 }
 0x521   :  { %v708_v61 = vsub.f32 %v706_v58, %v707_v59  ;;  %v715_v62 = vmul.f32 %v713_v60, %v677_v32 }
 0x523   :  { %v720_v63 = vrot.slane %v708_v61, %v1701_v53 }
 0x525   :  { %v722_v0 = vadd.f32 %v720_v63, %v715_v62 }
 0x527   :  { %1313 = vtanh.f32 %v722_v0 }
 0x531   :  { %v1314_v1 = vpop.eup %1313 }
 0x532   :  { %v724_v3 = vpack.c.bf16 %v1314_v1, %v1314_v1 }
 0x534   :  { %1206 = vmatmul.mubr.bf16.vlgmr.msra.gmra.mrb[8].mxu0 %v724_v3 }
 0x607   :  { %v824_v12 = vpop.f32.mrb[8].mxu0 }
 0x608   :  { %v830_v13 = vrot.slane %v824_v12, 4  ;;  %v836_v14 = vmul.f32 %v824_v12, %v824_v12  ;;  %v1207_v15 = vpop.f32.mrb[9].mxu0 }
 0x609   :  { %v827_v16 = vpop.f32.mrb[10].mxu0 }
 0x60a   :  { %v831_v17 = vadd.f32 %v830_v13, %v824_v12  ;;  %v837_v18 = vrot.slane %v836_v14, 4  ;;  %v1208_v19 = vpop.f32.mrb[11].mxu0 }
 0x60c   :  { %v832_v20 = vrot.slane %v831_v17, 2  ;;  %v838_v21 = vadd.f32 %v837_v18, %v836_v14 }
 0x60e   :  { %v833_v22 = vadd.f32 %v832_v20, %v831_v17  ;;  %v839_v23 = vrot.slane %v838_v21, 2 }
 0x610   :  { %v834_v24 = vrot.slane %v833_v22, 1  ;;  %v840_v25 = vadd.f32 %v839_v23, %v838_v21 }
 0x612   :  { %v835_v26 = vadd.f32 %v834_v24, %v833_v22  ;;  %v841_v27 = vrot.slane %v840_v25, 1 }
 0x614   :  { %v842_v28 = vadd.f32 %v841_v27, %v840_v25  ;;  %v843_v29 = vmul.f32 0.125, %v835_v26 }
 0x616   :  { %v844_v2 = vmul.f32 0.125, %v842_v28  ;;  %v845_v30 = vmul.f32 %v843_v29, %v843_v29 }
 0x618   :  { %v846_v31 = vsub.f32 %v844_v2, %v845_v30 }
 0x61a   :  { %v849_v32 = vadd.f32 1e-05, %v846_v31 }
 0x61c   :  { %1315 = vrsqrt.f32 %v849_v32 }
 0x626   :  { %v1316_v34 = vpop.eup %1315 }
 0x627   :  { %v851_v35 = vmul.f32 %v1316_v34, %v848_v33 }
 0x629   :  { %v854_v37 = vmul.f32 %v851_v35, %v843_v29  ;;  %v860_v38 = vrot.slane %v851_v35, %v1701_v53 }
 0x62b   :  { %v855_v39 = vsub.f32 %v853_v36, %v854_v37  ;;  %v862_v40 = vmul.f32 %v860_v38, %v824_v12 }
 0x62d   :  { %v867_v41 = vrot.slane %v855_v39, %v1701_v53 }
 0x62f   :  { %v869_v42 = vadd.f32 %v867_v41, %v862_v40 }
 0x631   :  { %1317 = vtanh.f32 %v869_v42 }
 0x63b   :  { %v1318_v43 = vpop.eup %1317 }
 0x63c   :  { %v871_v44 = vpack.c.bf16 %v1318_v43, %v1318_v43 }
 0x63e   :  { %1226 = vmatmul.mubr.bf16.vlgmr.msra.gmra.mrb[8].mxu1 %v871_v44 }
 0x711   :  { %v977_v46 = vpop.f32.mrb[8].mxu1 }
 0x712   :  { %v978_v47 = vadd.f32 %v1046_v45, %v977_v46  ;;  %v1227_v48 = vpop.f32.mrb[9].mxu1 }
 0x713   :  { %v980_v49 = vpop.f32.mrb[10].mxu1 }
 0x714   :  { %v983_v50 = vpack.c.bf16 %v978_v47, %v978_v47  ;;  %v1228_v51 = vpop.f32.mrb[11].mxu1 }
 0x716   :  { %984 = vst [vmem:[#allocation14] sm:$0xf] %v983_v50 }
 0x717   :  { %1484 = shalt.err (!%p1481_p4)
}
 0x718   :  { %s1485_s21 = scalar_lea.hbm %s1768_s7, 64 }
 0x719   :  { %p1486_p5 = scmp.ne.s32.totalorder %s1768_s7, %s1485_s21  ;;  %p1489_p6 = scmp.lt.u32.totalorder %s1485_s21, %s1768_s7 }
 0x71b   :  { %p1491_p7 = pnand %p1489_p6, %p1486_p5 }
 0x71d   :  { %1494 = shalt.err (!%p1491_p7)
}
 0x71e   :  { %994 = dma.vmem_to_hbm [thread:$0]  %s992_s10, 64, %s1768_s7, [#allocation4]  }
 0x71f   :  { %1503 = dma.done.wait [#allocation4], 64  }
 0x720   :  { %1504 = vsyncadd [#allocation4], 4294967232 }
 0x721   :  { %998 = vsyncpa [#allocation3], 1 }
 0x722   :  { %999 = vsyncpa [#allocation6], 1 }
 0x723   :  { %1000 = vsyncpa [#allocation9], 1 }
 0x724   :  { %1001 = vsyncpa [#allocation12], 1 }
 0x725   :  { %1002 = vsyncpa [#allocation4], 1 }

</bundles_post_ra>
